<compile_context>
chip_gen: v7x
topology: tpu7x:2x2x1
jax: 0.10.0
libtpu: 0.0.40
codegen_flags: <defaults>
</compile_context>

<pallas_src>
import math
from functools import partial

import jax
import jax.numpy as jnp
import numpy as np
from jax.experimental import pallas as pl
from jax.experimental.pallas import tpu as pltpu


def _init_embed_kernel(coords_ref, supply_wd_ref, demand_row_ref, demand_col_ref,
                       eye_ref, is_shelf_ref, w0_ref, w1_ref, ws2_ref, wk_ref, pe_ref,
                       node_ref, sku_ref, edge_ref, agent_ref,
                       *, num_depots, num_skus, num_shelves, capacity,
                       scale_supply_by_demand):
    coords = coords_ref[...].astype(jnp.float32)        # [TB, N, 2]
    supply_wd = supply_wd_ref[...].astype(jnp.float32)  # [TB, N, K]
    demand_row = demand_row_ref[...]                     # [TB, 1, K]
    demand_col = demand_col_ref[...]                     # [TB, K, 1]
    eye_k = eye_ref[...]                                 # [K, K]
    is_shelf = is_shelf_ref[...]                         # [N, 1]  (1.0 shelf / 0.0 depot)
    w0 = w0_ref[...]                                     # [N, D] per-row weight for coord x
    w1 = w1_ref[...]                                     # [N, D] per-row weight for coord y
    ws2 = ws2_ref[...]                                   # [1, D] shelf weight, "num stored" feat
    wk = wk_ref[...]                                     # [2, D] sku_proj.weight^T
    pe = pe_ref[...]                                     # [A, D] sinusoidal PE table

    # Shelf-only "sku is stored here" indicator.  The explicit shelf mask removes any
    # reliance on the depot-rows-of-supply_w_depot-are-zero contract.
    stored = (supply_wd > 0.0).astype(jnp.float32) * is_shelf         # [TB, N, K]

    # ---- node embedding: ONE aligned [TB, N, D] store --------------------------------
    num_stored_skus = jnp.sum(stored, axis=-1, keepdims=True)         # [TB, N, 1] lane reduce
    shelf_f2 = num_stored_skus * (1.0 / num_skus)                     # 0 on depot rows
    node = (coords[:, :, 0:1] * w0
            + coords[:, :, 1:2] * w1
            + shelf_f2 * ws2)                                         # [TB, N, D]
    node_ref[...] = node.astype(node_ref.dtype)

    # ---- agent embedding: emit immediately so `node`'s live range ends here -----------
    # TODO(synk): PositionalEncoding dropout omitted (eval-mode identity); agent_order is
    # arange(num_agents), so the PE lookup is trivial and the table is built in the wrapper.
    agent_ref[...] = (node[:, 0:num_depots, :] + pe).astype(agent_ref.dtype)

    # ---- sku embedding (vectorized over the whole batch tile, no Python unroll) -------
    # The per-sku storage-location count lives in lanes after the sublane reduce; move it
    # to sublanes with an eye-masked lane reduce (pure VPU broadcast/mul/reduce — a tiny
    # "manual transpose" that keeps the MXU/XLU idle and always lowers).
    count_row = jnp.sum(stored, axis=1, keepdims=True)                # [TB, 1, K]
    count_col = jnp.sum(count_row * eye_k, axis=-1, keepdims=True)    # [TB, K, 1]
    sku = ((demand_col * (1.0 / capacity)) * wk[0:1, :]
           + (count_col * (1.0 / num_shelves)) * wk[1:2, :])          # [TB, K, D]
    sku_ref[...] = sku.astype(sku_ref.dtype)

    # ---- edge embedding -----------------------------------------------------------------
    if scale_supply_by_demand:
        # Divide hoisted to K elements on zero-protected demand (no inf even pre-mask);
        # the big [TB, N, K] tensor only sees a VPU multiply + min.
        safe_demand = jnp.where(demand_row == 0.0, 1.0, demand_row)
        recip = jnp.where(demand_row == 0.0, 0.0,
                          pl.reciprocal(safe_demand, approx=False))   # [TB, 1, K]
        edge = jnp.minimum(supply_wd * recip, 1.0)
    else:
        edge = supply_wd * (1.0 / capacity)
    edge_ref[...] = edge.astype(edge_ref.dtype)


def _tpu_vmem_and_cores():
    """Best-effort query of per-core VMEM capacity and dual-TensorCore-ness."""
    try:
        vmem_cap = int(pltpu.get_tpu_info().vmem_capacity_bytes)
    except Exception:
        vmem_cap = None
    kind = ""
    try:
        kind = jax.devices()[0].device_kind.lower()
    except Exception:
        pass
    dual_core = "7" in kind                 # v7x parts have 2 TensorCores per chip
    if not vmem_cap or vmem_cap <= 0:
        vmem_cap = 64 << 20                 # conservative fallback (v7x per-core VMEM)
    return vmem_cap, dual_core


def _choose_batch_tile(bs, per_batch_bytes, budget_bytes, *, dual_core):
    tb = max(1, min(bs, budget_bytes // max(per_batch_bytes, 1)))
    if dual_core and bs >= 2:
        # keep >= 2 grid steps so the "parallel" batch axis can shard across both TCs.
        tb = min(tb, pl.cdiv(bs, 2))
    # even out step sizes without increasing the number of grid steps.
    tb = pl.cdiv(bs, pl.cdiv(bs, tb))
    return int(tb)


def equity_transformer_init_embedding(coords, supply_w_depot, demand, capacity,
                                      w_depot, w_shelf, w_sku, pe,
                                      *, num_depots=1, scale_supply_by_demand=True,
                                      out_dtype=jnp.bfloat16, batch_tile=None):
    """Fused EquityTransformerInitEmbedding forward.

    Weights use PyTorch nn.Linear layout [out_features, in_features], bias=False.
    `out_dtype` defaults to bfloat16 (halves HBM write-back of this memory-bound kernel);
    pass jnp.float32 to reproduce the PyTorch module's output dtype exactly.
    """
    assert num_depots == 1, "ET only implemented for single depot instances yet"
    bs, n_nodes, _ = coords.shape
    n_skus = supply_w_depot.shape[2]
    n_shelves = n_nodes - num_depots
    n_agents, d = pe.shape

    # ---- grid-invariant glue, hoisted out of the kernel (tiny, computed once per call) ---
    demand_row = demand[:, None, :].astype(jnp.float32)        # [B, 1, K] (edge scaling)
    demand_col = demand[:, :, None].astype(jnp.float32)        # [B, K, 1] (sku embedding)
    eye_k = jnp.eye(n_skus, dtype=jnp.float32)                  # [K, K]
    row_ids = jnp.arange(n_nodes, dtype=jnp.int32)[:, None]
    is_depot = row_ids < num_depots                             # [N, 1]
    is_shelf = (~is_depot).astype(jnp.float32)                  # [N, 1]
    wd_t = jnp.transpose(w_depot).astype(jnp.float32)           # [2, D]
    ws_t = jnp.transpose(w_shelf).astype(jnp.float32)           # [3, D]
    w0_sel = jnp.where(is_depot, wd_t[0:1, :], ws_t[0:1, :])    # [N, D]
    w1_sel = jnp.where(is_depot, wd_t[1:2, :], ws_t[1:2, :])    # [N, D]
    ws2 = ws_t[2:3, :]                                           # [1, D]
    wk_t = jnp.transpose(w_sku).astype(jnp.float32)             # [2, D]
    pe_f32 = pe.astype(jnp.float32)

    # ---- generation-aware batch-tile sizing -----------------------------------------------
    in_item = jnp.dtype(supply_w_depot.dtype).itemsize
    out_item = jnp.dtype(out_dtype).itemsize
    per_batch_in = 4 * (n_nodes * 2 + 2 * n_skus) + in_item * n_nodes * n_skus
    per_batch_out = out_item * (n_nodes * d + n_skus * d + n_nodes * n_skus + n_agents * d)
    per_batch_mid = 4 * (2 * n_nodes * n_skus + n_nodes * d + n_skus * n_skus
                         + n_skus * d + n_agents * d)
    per_batch_bytes = 2 * (per_batch_in + per_batch_out) + per_batch_mid  # x2: double-buffered I/O
    shared_bytes = 2 * 4 * (n_skus * n_skus + n_nodes + 2 * n_nodes * d + 3 * d + n_agents * d)

    vmem_cap, dual_core = _tpu_vmem_and_cores()
    vmem_limit = (vmem_cap * 3) // 4          # ~48 MiB on v7x, ~96 MiB on v5e/v6e
    budget = max(vmem_limit - shared_bytes - (2 << 20), per_batch_bytes)
    tb = batch_tile if batch_tile is not None else _choose_batch_tile(
        bs, per_batch_bytes, budget, dual_core=dual_core)
    grid_steps = pl.cdiv(bs, tb)              # non-divisor batches: last block is masked

    kernel = partial(_init_embed_kernel,
                     num_depots=num_depots, num_skus=n_skus, num_shelves=n_shelves,
                     capacity=float(capacity),
                     scale_supply_by_demand=scale_supply_by_demand)

    batched = lambda shape: pl.BlockSpec((tb,) + shape, lambda b: (b, 0, 0))
    shared = lambda shape: pl.BlockSpec(shape, lambda b: (0, 0))

    out_shape = (
        jax.ShapeDtypeStruct((bs, n_nodes, d), out_dtype),         # node_emb
        jax.ShapeDtypeStruct((bs, n_skus, d), out_dtype),          # sku_emb
        jax.ShapeDtypeStruct((bs, n_nodes, n_skus), out_dtype),    # edge_emb
        jax.ShapeDtypeStruct((bs, n_agents, d), out_dtype),        # agent_emb
    )
    # TODO(synk): for production sizes keep D a multiple of 128 (lane-dense node/sku/agent
    # stores); edge_emb's last dim is num_skus — pad K to 128 upstream if its write-back
    # dominates (masked vst.msk partial stores otherwise).

    return pl.pallas_call(
        kernel,
        out_shape=out_shape,
        grid=(grid_steps,),
        in_specs=[
            batched((n_nodes, 2)),         # coordinates
            batched((n_nodes, n_skus)),    # supply_w_depot (single read of the big tensor)
            batched((1, n_skus)),          # demand, row layout
            batched((n_skus, 1)),          # demand, column layout
            shared((n_skus, n_skus)),      # eye(K) for the lanes->sublanes count move
            shared((n_nodes, 1)),          # shelf-row mask
            shared((n_nodes, d)),          # per-row weight for coord x (depot/shelf select)
            shared((n_nodes, d)),          # per-row weight for coord y
            shared((1, d)),                # shelf weight row 2 (num-stored feature)
            shared((2, d)),                # sku_proj.weight^T
            shared((n_agents, d)),         # sinusoidal PE table
        ],
        out_specs=[
            batched((n_nodes, d)),
            batched((n_skus, d)),
            batched((n_nodes, n_skus)),
            batched((n_agents, d)),
        ],
        compiler_params=pltpu.CompilerParams(
            dimension_semantics=("parallel",),
            vmem_limit_bytes=int(vmem_limit)),
    )(coords, supply_w_depot, demand_row, demand_col, eye_k, is_shelf,
      w0_sel, w1_sel, ws2, wk_t, pe_f32)


def _sinusoidal_pe(num_pos, d):
    position = np.arange(num_pos, dtype=np.float32)[:, None]
    div_term = np.exp(np.arange(0, d, 2, dtype=np.float32) * (-math.log(10000.0) / d))
    pe = np.zeros((num_pos, d), dtype=np.float32)
    pe[:, 0::2] = np.sin(position * div_term)
    pe[:, 1::2] = np.cos(position * div_term)
    return jnp.asarray(pe)


def _reference(coords, supply, supply_w_depot, demand, capacity,
               w_depot, w_shelf, w_sku, pe, *, num_depots=1, scale_supply_by_demand=True):
    n_shelves, n_skus = supply.shape[1], supply.shape[2]
    depot_emb = coords[:, :num_depots] @ w_depot.T
    shelf_coords = coords[:, num_depots:]
    num_stored = (supply > 0).sum(-1).astype(jnp.float32)
    shelf_feats = jnp.stack([shelf_coords[..., 0], shelf_coords[..., 1],
                             num_stored / n_skus], axis=-1)
    shelf_emb = shelf_feats @ w_shelf.T
    num_storage_loc = (supply > 0).sum(1).astype(jnp.float32)
    sku_feats = jnp.stack([demand / capacity, num_storage_loc / n_shelves], axis=-1)
    sku_emb = sku_feats @ w_sku.T
    if scale_supply_by_demand:
        dexp = jnp.broadcast_to(demand[:, None, :], supply_w_depot.shape)
        edge = jnp.where(dexp == 0, jnp.zeros_like(supply_w_depot),
                         jnp.minimum(supply_w_depot / demand[:, None, :], 1.0))
    else:
        edge = supply_w_depot / capacity
    agent_emb = depot_emb + pe[None, :, :]
    node_emb = jnp.concatenate([depot_emb, shelf_emb], axis=1)
    return node_emb, sku_emb, edge, agent_emb


if __name__ == "__main__":
    bs, num_depots, num_shelves, num_skus, num_agents, embed_dim = 6, 1, 8, 4, 4, 32
    num_nodes = num_depots + num_shelves
    capacity = 10.0

    key = jax.random.PRNGKey(0)
    kc, ks, kd, kw1, kw2, kw3 = jax.random.split(key, 6)

    coordinates = jax.random.uniform(kc, (bs, num_nodes, 2), dtype=jnp.float32)
    supply = jax.random.randint(ks, (bs, num_shelves, num_skus), 0, 6).astype(jnp.float32)
    supply_w_depot = jnp.concatenate(
        [jnp.zeros((bs, num_depots, num_skus), jnp.float32), supply], axis=1)
    demand = jax.random.randint(kd, (bs, num_skus), 0, 4).astype(jnp.float32)
    demand = demand.at[:, 0].set(0.0)   # exercise the zero-demand edge path
    # remaining_capacity only defines num_agents in MSPRPState; num_agents is used directly.

    # deterministic params, PyTorch Linear layout [out_features, in_features], bias=False
    w_depot = jax.random.uniform(kw1, (embed_dim, 2), jnp.float32, -1, 1) / math.sqrt(2)
    w_shelf = jax.random.uniform(kw2, (embed_dim, 3), jnp.float32, -1, 1) / math.sqrt(3)
    w_sku = jax.random.uniform(kw3, (embed_dim, 2), jnp.float32, -1, 1) / math.sqrt(2)
    pe = _sinusoidal_pe(num_agents, embed_dim)

    cases = [
        # f32 outputs, bit-tight against the pure-JAX reference
        dict(scale=True, out_dtype=jnp.float32, batch_tile=None, rtol=1e-5, atol=1e-5),
        dict(scale=False, out_dtype=jnp.float32, batch_tile=None, rtol=1e-5, atol=1e-5),
        # non-divisor batch tiling: grid = cdiv(6, 4) = 2, last block half out-of-bounds
        dict(scale=True, out_dtype=jnp.float32, batch_tile=4, rtol=1e-5, atol=1e-5),
        # default bf16 outputs (production path)
        dict(scale=True, out_dtype=jnp.bfloat16, batch_tile=None, rtol=2e-2, atol=2e-2),
    ]
    for case in cases:
        outs = equity_transformer_init_embedding(
            coordinates, supply_w_depot, demand, capacity,
            w_depot, w_shelf, w_sku, pe,
            num_depots=num_depots, scale_supply_by_demand=case["scale"],
            out_dtype=case["out_dtype"], batch_tile=case["batch_tile"])
        outs = jax.block_until_ready(outs)

        refs = _reference(coordinates, supply, supply_w_depot, demand, capacity,
                          w_depot, w_shelf, w_sku, pe,
                          num_depots=num_depots, scale_supply_by_demand=case["scale"])
        for o, r in zip(outs, refs):
            np.testing.assert_allclose(np.asarray(o.astype(jnp.float32)), np.asarray(r),
                                       rtol=case["rtol"], atol=case["atol"])

    print("KERNEL_OK")
</pallas_src>

<mosaic_0001>
module attributes {stable_mosaic.version = 11 : i64} {
  func.func @_init_embed_kernel(%arg0: i32, %arg1: memref<6x9x2xf32, #tpu.memory_space<vmem>>, %arg2: memref<6x9x4xf32, #tpu.memory_space<vmem>>, %arg3: memref<6x1x4xf32, #tpu.memory_space<vmem>>, %arg4: memref<6x4x1xf32, #tpu.memory_space<vmem>>, %arg5: memref<4x4xf32, #tpu.memory_space<vmem>>, %arg6: memref<9x1xf32, #tpu.memory_space<vmem>>, %arg7: memref<9x32xf32, #tpu.memory_space<vmem>>, %arg8: memref<9x32xf32, #tpu.memory_space<vmem>>, %arg9: memref<1x32xf32, #tpu.memory_space<vmem>>, %arg10: memref<2x32xf32, #tpu.memory_space<vmem>>, %arg11: memref<4x32xf32, #tpu.memory_space<vmem>>, %arg12: memref<6x9x32xf32, #tpu.memory_space<vmem>>, %arg13: memref<6x4x32xf32, #tpu.memory_space<vmem>>, %arg14: memref<6x9x4xf32, #tpu.memory_space<vmem>>, %arg15: memref<6x4x32xf32, #tpu.memory_space<vmem>>) attributes {dimension_semantics = [#tpu.dimension_semantics<parallel>], iteration_bounds = array<i64: 1>, scalar_prefetch = 0 : i64, scratch_operands = 0 : i64, tpu.core_type = #tpu.core_type<tc>, window_params = [{transform_indices = @transform_0, window_bounds = array<i64: 6, 9, 2>}, {transform_indices = @transform_1, window_bounds = array<i64: 6, 9, 4>}, {transform_indices = @transform_2, window_bounds = array<i64: 6, 1, 4>}, {transform_indices = @transform_3, window_bounds = array<i64: 6, 4, 1>}, {pipeline_mode = #tpu.pipeline_mode<synchronous>, transform_indices = @transform_4, window_bounds = array<i64: 4, 4>}, {pipeline_mode = #tpu.pipeline_mode<synchronous>, transform_indices = @transform_5, window_bounds = array<i64: 9, 1>}, {pipeline_mode = #tpu.pipeline_mode<synchronous>, transform_indices = @transform_6, window_bounds = array<i64: 9, 32>}, {pipeline_mode = #tpu.pipeline_mode<synchronous>, transform_indices = @transform_7, window_bounds = array<i64: 9, 32>}, {pipeline_mode = #tpu.pipeline_mode<synchronous>, transform_indices = @transform_8, window_bounds = array<i64: 1, 32>}, {pipeline_mode = #tpu.pipeline_mode<synchronous>, transform_indices = @transform_9, window_bounds = array<i64: 2, 32>}, {pipeline_mode = #tpu.pipeline_mode<synchronous>, transform_indices = @transform_10, window_bounds = array<i64: 4, 32>}, {transform_indices = @transform_11, window_bounds = array<i64: 6, 9, 32>}, {transform_indices = @transform_12, window_bounds = array<i64: 6, 4, 32>}, {transform_indices = @transform_13, window_bounds = array<i64: 6, 9, 4>}, {transform_indices = @transform_14, window_bounds = array<i64: 6, 4, 32>}]} {
    %c0 = arith.constant 0 : index
    %c0_0 = arith.constant 0 : index
    %c0_1 = arith.constant 0 : index
    %0 = vector.load %arg1[%c0, %c0_0, %c0_1] : memref<6x9x2xf32, #tpu.memory_space<vmem>>, vector<6x9x2xf32>
    %c0_2 = arith.constant 0 : index
    %c0_3 = arith.constant 0 : index
    %c0_4 = arith.constant 0 : index
    %1 = vector.load %arg2[%c0_2, %c0_3, %c0_4] : memref<6x9x4xf32, #tpu.memory_space<vmem>>, vector<6x9x4xf32>
    %c0_5 = arith.constant 0 : index
    %c0_6 = arith.constant 0 : index
    %c0_7 = arith.constant 0 : index
    %2 = vector.load %arg3[%c0_5, %c0_6, %c0_7] : memref<6x1x4xf32, #tpu.memory_space<vmem>>, vector<6x1x4xf32>
    %c0_8 = arith.constant 0 : index
    %c0_9 = arith.constant 0 : index
    %c0_10 = arith.constant 0 : index
    %3 = vector.load %arg4[%c0_8, %c0_9, %c0_10] : memref<6x4x1xf32, #tpu.memory_space<vmem>>, vector<6x4x1xf32>
    %c0_11 = arith.constant 0 : index
    %c0_12 = arith.constant 0 : index
    %4 = vector.load %arg5[%c0_11, %c0_12] : memref<4x4xf32, #tpu.memory_space<vmem>>, vector<4x4xf32>
    %c0_13 = arith.constant 0 : index
    %c0_14 = arith.constant 0 : index
    %5 = vector.load %arg6[%c0_13, %c0_14] : memref<9x1xf32, #tpu.memory_space<vmem>>, vector<9x1xf32>
    %c0_15 = arith.constant 0 : index
    %c0_16 = arith.constant 0 : index
    %6 = vector.load %arg7[%c0_15, %c0_16] : memref<9x32xf32, #tpu.memory_space<vmem>>, vector<9x32xf32>
    %c0_17 = arith.constant 0 : index
    %c0_18 = arith.constant 0 : index
    %7 = vector.load %arg8[%c0_17, %c0_18] : memref<9x32xf32, #tpu.memory_space<vmem>>, vector<9x32xf32>
    %c0_19 = arith.constant 0 : index
    %c0_20 = arith.constant 0 : index
    %8 = vector.load %arg9[%c0_19, %c0_20] : memref<1x32xf32, #tpu.memory_space<vmem>>, vector<1x32xf32>
    %c0_21 = arith.constant 0 : index
    %c0_22 = arith.constant 0 : index
    %9 = vector.load %arg10[%c0_21, %c0_22] : memref<2x32xf32, #tpu.memory_space<vmem>>, vector<2x32xf32>
    %c0_23 = arith.constant 0 : index
    %c0_24 = arith.constant 0 : index
    %10 = vector.load %arg11[%c0_23, %c0_24] : memref<4x32xf32, #tpu.memory_space<vmem>>, vector<4x32xf32>
    %cst = arith.constant 0.000000e+00 : f32
    %11 = vector.broadcast %cst : f32 to vector<6x9x4xf32>
    %12 = arith.cmpf ogt, %1, %11 : vector<6x9x4xf32>
    %13 = arith.extui %12 : vector<6x9x4xi1> to vector<6x9x4xi32>
    %14 = arith.sitofp %13 : vector<6x9x4xi32> to vector<6x9x4xf32>
    %15 = vector.shape_cast %5 : vector<9x1xf32> to vector<1x9x1xf32>
    %16 = vector.broadcast %15 : vector<1x9x1xf32> to vector<6x9x4xf32>
    %17 = arith.mulf %14, %16 : vector<6x9x4xf32>
    %cst_25 = arith.constant dense<0.000000e+00> : vector<6x9xf32>
    %18 = vector.multi_reduction <add>, %17, %cst_25 [2] : vector<6x9x4xf32> to vector<6x9xf32>
    %19 = vector.shape_cast %18 : vector<6x9xf32> to vector<6x9x1xf32>
    %cst_26 = arith.constant 2.500000e-01 : f32
    %20 = vector.broadcast %cst_26 : f32 to vector<6x9x1xf32>
    %21 = arith.mulf %19, %20 : vector<6x9x1xf32>
    %22 = vector.extract_strided_slice %0 {offsets = [0, 0, 0], sizes = [6, 9, 1], strides = [1, 1, 1]} : vector<6x9x2xf32> to vector<6x9x1xf32>
    %23 = vector.shape_cast %6 : vector<9x32xf32> to vector<1x9x32xf32>
    %24 = vector.broadcast %22 : vector<6x9x1xf32> to vector<6x9x32xf32>
    %25 = vector.broadcast %23 : vector<1x9x32xf32> to vector<6x9x32xf32>
    %26 = arith.mulf %24, %25 : vector<6x9x32xf32>
    %27 = vector.extract_strided_slice %0 {offsets = [0, 0, 1], sizes = [6, 9, 1], strides = [1, 1, 1]} : vector<6x9x2xf32> to vector<6x9x1xf32>
    %28 = vector.shape_cast %7 : vector<9x32xf32> to vector<1x9x32xf32>
    %29 = vector.broadcast %27 : vector<6x9x1xf32> to vector<6x9x32xf32>
    %30 = vector.broadcast %28 : vector<1x9x32xf32> to vector<6x9x32xf32>
    %31 = arith.mulf %29, %30 : vector<6x9x32xf32>
    %32 = arith.addf %26, %31 : vector<6x9x32xf32>
    %33 = vector.shape_cast %8 : vector<1x32xf32> to vector<1x1x32xf32>
    %34 = vector.broadcast %21 : vector<6x9x1xf32> to vector<6x9x32xf32>
    %35 = vector.broadcast %33 : vector<1x1x32xf32> to vector<6x9x32xf32>
    %36 = arith.mulf %34, %35 : vector<6x9x32xf32>
    %37 = arith.addf %32, %36 : vector<6x9x32xf32>
    %c0_27 = arith.constant 0 : index
    %c0_28 = arith.constant 0 : index
    %c0_29 = arith.constant 0 : index
    %38 = vector.load %arg12[%c0_27, %c0_28, %c0_29] : memref<6x9x32xf32, #tpu.memory_space<vmem>>, vector<6x9x32xf32>
    tpu.vector_store %arg12[%c0_27, %c0_28, %c0_29], %37 {strides = array<i32>} : memref<6x9x32xf32, #tpu.memory_space<vmem>>, vector<6x9x32xf32>,
    %39 = vector.extract_strided_slice %37 {offsets = [0, 0, 0], sizes = [6, 1, 32], strides = [1, 1, 1]} : vector<6x9x32xf32> to vector<6x1x32xf32>
    %40 = vector.shape_cast %10 : vector<4x32xf32> to vector<1x4x32xf32>
    %41 = vector.broadcast %39 : vector<6x1x32xf32> to vector<6x4x32xf32>
    %42 = vector.broadcast %40 : vector<1x4x32xf32> to vector<6x4x32xf32>
    %43 = arith.addf %41, %42 : vector<6x4x32xf32>
    %c0_30 = arith.constant 0 : index
    %c0_31 = arith.constant 0 : index
    %c0_32 = arith.constant 0 : index
    %44 = vector.load %arg15[%c0_30, %c0_31, %c0_32] : memref<6x4x32xf32, #tpu.memory_space<vmem>>, vector<6x4x32xf32>
    tpu.vector_store %arg15[%c0_30, %c0_31, %c0_32], %43 {strides = array<i32>} : memref<6x4x32xf32, #tpu.memory_space<vmem>>, vector<6x4x32xf32>,
    %cst_33 = arith.constant dense<0.000000e+00> : vector<6x4xf32>
    %45 = vector.multi_reduction <add>, %17, %cst_33 [1] : vector<6x9x4xf32> to vector<6x4xf32>
    %46 = vector.shape_cast %45 : vector<6x4xf32> to vector<6x1x4xf32>
    %47 = vector.shape_cast %4 : vector<4x4xf32> to vector<1x4x4xf32>
    %48 = vector.broadcast %46 : vector<6x1x4xf32> to vector<6x4x4xf32>
    %49 = vector.broadcast %47 : vector<1x4x4xf32> to vector<6x4x4xf32>
    %50 = arith.mulf %48, %49 : vector<6x4x4xf32>
    %cst_34 = arith.constant dense<0.000000e+00> : vector<6x4xf32>
    %51 = vector.multi_reduction <add>, %50, %cst_34 [2] : vector<6x4x4xf32> to vector<6x4xf32>
    %52 = vector.shape_cast %51 : vector<6x4xf32> to vector<6x4x1xf32>
    %cst_35 = arith.constant 1.000000e-01 : f32
    %53 = vector.broadcast %cst_35 : f32 to vector<6x4x1xf32>
    %54 = arith.mulf %3, %53 : vector<6x4x1xf32>
    %55 = vector.extract_strided_slice %9 {offsets = [0, 0], sizes = [1, 32], strides = [1, 1]} : vector<2x32xf32> to vector<1x32xf32>
    %56 = vector.shape_cast %55 : vector<1x32xf32> to vector<1x1x32xf32>
    %57 = vector.broadcast %54 : vector<6x4x1xf32> to vector<6x4x32xf32>
    %58 = vector.broadcast %56 : vector<1x1x32xf32> to vector<6x4x32xf32>
    %59 = arith.mulf %57, %58 : vector<6x4x32xf32>
    %cst_36 = arith.constant 1.250000e-01 : f32
    %60 = vector.broadcast %cst_36 : f32 to vector<6x4x1xf32>
    %61 = arith.mulf %52, %60 : vector<6x4x1xf32>
    %62 = vector.extract_strided_slice %9 {offsets = [1, 0], sizes = [1, 32], strides = [1, 1]} : vector<2x32xf32> to vector<1x32xf32>
    %63 = vector.shape_cast %62 : vector<1x32xf32> to vector<1x1x32xf32>
    %64 = vector.broadcast %61 : vector<6x4x1xf32> to vector<6x4x32xf32>
    %65 = vector.broadcast %63 : vector<1x1x32xf32> to vector<6x4x32xf32>
    %66 = arith.mulf %64, %65 : vector<6x4x32xf32>
    %67 = arith.addf %59, %66 : vector<6x4x32xf32>
    %c0_37 = arith.constant 0 : index
    %c0_38 = arith.constant 0 : index
    %c0_39 = arith.constant 0 : index
    %68 = vector.load %arg13[%c0_37, %c0_38, %c0_39] : memref<6x4x32xf32, #tpu.memory_space<vmem>>, vector<6x4x32xf32>
    tpu.vector_store %arg13[%c0_37, %c0_38, %c0_39], %67 {strides = array<i32>} : memref<6x4x32xf32, #tpu.memory_space<vmem>>, vector<6x4x32xf32>,
    %cst_40 = arith.constant 0.000000e+00 : f32
    %69 = vector.broadcast %cst_40 : f32 to vector<6x1x4xf32>
    %70 = arith.cmpf oeq, %2, %69 : vector<6x1x4xf32>
    %cst_41 = arith.constant 1.000000e+00 : f32
    %71 = vector.broadcast %cst_41 : f32 to vector<6x1x4xf32>
    %72 = arith.select %70, %71, %2 : vector<6x1x4xi1>, vector<6x1x4xf32>
    %cst_42 = arith.constant 0.000000e+00 : f32
    %73 = vector.broadcast %cst_42 : f32 to vector<6x1x4xf32>
    %74 = arith.cmpf oeq, %2, %73 : vector<6x1x4xf32>
    %75 = tpu.reciprocal %72 : vector<6x1x4xf32> -> vector<6x1x4xf32>
    %cst_43 = arith.constant 0.000000e+00 : f32
    %76 = vector.broadcast %cst_43 : f32 to vector<6x1x4xf32>
    %77 = arith.select %74, %76, %75 : vector<6x1x4xi1>, vector<6x1x4xf32>
    %78 = vector.broadcast %77 : vector<6x1x4xf32> to vector<6x9x4xf32>
    %79 = arith.mulf %1, %78 : vector<6x9x4xf32>
    %cst_44 = arith.constant 1.000000e+00 : f32
    %80 = vector.broadcast %cst_44 : f32 to vector<6x9x4xf32>
    %81 = arith.minimumf %79, %80 : vector<6x9x4xf32>
    %c0_45 = arith.constant 0 : index
    %c0_46 = arith.constant 0 : index
    %c0_47 = arith.constant 0 : index
    %82 = vector.load %arg14[%c0_45, %c0_46, %c0_47] : memref<6x9x4xf32, #tpu.memory_space<vmem>>, vector<6x9x4xf32>
    tpu.vector_store %arg14[%c0_45, %c0_46, %c0_47], %81 {strides = array<i32>} : memref<6x9x4xf32, #tpu.memory_space<vmem>>, vector<6x9x4xf32>,
    return
  }
  func.func @transform_0(%arg0: i32) -> (i32, i32, i32) {
    %c0_i32 = arith.constant 0 : i32
    %c0_i32_0 = arith.constant 0 : i32
    %c0_i32_1 = arith.constant 0 : i32
    return %arg0, %c0_i32, %c0_i32_0 : i32, i32, i32
  }
  func.func @transform_1(%arg0: i32) -> (i32, i32, i32) {
    %c0_i32 = arith.constant 0 : i32
    %c0_i32_0 = arith.constant 0 : i32
    %c0_i32_1 = arith.constant 0 : i32
    return %arg0, %c0_i32, %c0_i32_0 : i32, i32, i32
  }
  func.func @transform_2(%arg0: i32) -> (i32, i32, i32) {
    %c0_i32 = arith.constant 0 : i32
    %c0_i32_0 = arith.constant 0 : i32
    %c0_i32_1 = arith.constant 0 : i32
    return %arg0, %c0_i32, %c0_i32_0 : i32, i32, i32
  }
  func.func @transform_3(%arg0: i32) -> (i32, i32, i32) {
    %c0_i32 = arith.constant 0 : i32
    %c0_i32_0 = arith.constant 0 : i32
    %c0_i32_1 = arith.constant 0 : i32
    return %arg0, %c0_i32, %c0_i32_0 : i32, i32, i32
  }
  func.func @transform_4(%arg0: i32) -> (i32, i32) {
    %c0_i32 = arith.constant 0 : i32
    %c0_i32_0 = arith.constant 0 : i32
    %c0_i32_1 = arith.constant 0 : i32
    return %c0_i32, %c0_i32_0 : i32, i32
  }
  func.func @transform_5(%arg0: i32) -> (i32, i32) {
    %c0_i32 = arith.constant 0 : i32
    %c0_i32_0 = arith.constant 0 : i32
    %c0_i32_1 = arith.constant 0 : i32
    return %c0_i32, %c0_i32_0 : i32, i32
  }
  func.func @transform_6(%arg0: i32) -> (i32, i32) {
    %c0_i32 = arith.constant 0 : i32
    %c0_i32_0 = arith.constant 0 : i32
    %c0_i32_1 = arith.constant 0 : i32
    return %c0_i32, %c0_i32_0 : i32, i32
  }
  func.func @transform_7(%arg0: i32) -> (i32, i32) {
    %c0_i32 = arith.constant 0 : i32
    %c0_i32_0 = arith.constant 0 : i32
    %c0_i32_1 = arith.constant 0 : i32
    return %c0_i32, %c0_i32_0 : i32, i32
  }
  func.func @transform_8(%arg0: i32) -> (i32, i32) {
    %c0_i32 = arith.constant 0 : i32
    %c0_i32_0 = arith.constant 0 : i32
    %c0_i32_1 = arith.constant 0 : i32
    return %c0_i32, %c0_i32_0 : i32, i32
  }
  func.func @transform_9(%arg0: i32) -> (i32, i32) {
    %c0_i32 = arith.constant 0 : i32
    %c0_i32_0 = arith.constant 0 : i32
    %c0_i32_1 = arith.constant 0 : i32
    return %c0_i32, %c0_i32_0 : i32, i32
  }
  func.func @transform_10(%arg0: i32) -> (i32, i32) {
    %c0_i32 = arith.constant 0 : i32
    %c0_i32_0 = arith.constant 0 : i32
    %c0_i32_1 = arith.constant 0 : i32
    return %c0_i32, %c0_i32_0 : i32, i32
  }
  func.func @transform_11(%arg0: i32) -> (i32, i32, i32) {
    %c0_i32 = arith.constant 0 : i32
    %c0_i32_0 = arith.constant 0 : i32
    %c0_i32_1 = arith.constant 0 : i32
    return %arg0, %c0_i32, %c0_i32_0 : i32, i32, i32
  }
  func.func @transform_12(%arg0: i32) -> (i32, i32, i32) {
    %c0_i32 = arith.constant 0 : i32
    %c0_i32_0 = arith.constant 0 : i32
    %c0_i32_1 = arith.constant 0 : i32
    return %arg0, %c0_i32, %c0_i32_0 : i32, i32, i32
  }
  func.func @transform_13(%arg0: i32) -> (i32, i32, i32) {
    %c0_i32 = arith.constant 0 : i32
    %c0_i32_0 = arith.constant 0 : i32
    %c0_i32_1 = arith.constant 0 : i32
    return %arg0, %c0_i32, %c0_i32_0 : i32, i32, i32
  }
  func.func @transform_14(%arg0: i32) -> (i32, i32, i32) {
    %c0_i32 = arith.constant 0 : i32
    %c0_i32_0 = arith.constant 0 : i32
    %c0_i32_1 = arith.constant 0 : i32
    return %arg0, %c0_i32, %c0_i32_0 : i32, i32, i32
  }
}

</mosaic_0001>

<bundles_post_ra>
// kernel: tpu_custom_call.1
= control target key start
LH: loop header
LB: loop body
LE: loop exit
PB: predicated region body
PF: predicated region fallthrough
CT: control target
= control target key end

     0   :  { %20 = vsyncpa [#allocation3], 0  ;;  %v786_v2 = vmov 0   ;;  %v787_v12 = vmov 1   ;;  %v386_v13 = vlaneseq  ;;  %s1354_s0 = inlined_call_operand.vmem [shape: f32[6,9,2], index: 0, kind: input, shape index: {}]   ;;  %s1355_s1 = inlined_call_operand.vmem [shape: f32[6,9,4], index: 1, kind: input, shape index: {}]   ;;  %s1356_s2 = inlined_call_operand.vmem [shape: f32[6,1,4], index: 2, kind: input, shape index: {}]   ;;  %s1357_s3 = inlined_call_operand.vmem [shape: f32[6,4,1], index: 3, kind: input, shape index: {}]   ;;  %s1358_s4 = inlined_call_operand.vmem [shape: f32[4,4], index: 4, kind: input, shape index: {}]   ;;  %s1359_s5 = inlined_call_operand.vmem [shape: f32[9,1], index: 5, kind: input, shape index: {}]   ;;  %s1360_s6 = inlined_call_operand.vmem [shape: f32[9,32], index: 6, kind: input, shape index: {}]   ;;  %s1361_s7 = inlined_call_operand.vmem [shape: f32[9,32], index: 7, kind: input, shape index: {}]   ;;  %s1362_s8 = inlined_call_operand.vmem [shape: f32[1,32], index: 8, kind: input, shape index: {}]   ;;  %s1363_s9 = inlined_call_operand.vmem [shape: f32[2,32], index: 9, kind: input, shape index: {}]   ;;  %s1364_s10 = inlined_call_operand.vmem [shape: f32[4,32], index: 10, kind: input, shape index: {}]   ;;  %s1365_s11 = inlined_call_operand.vmem [shape: f32[6,9,32], index: 11, kind: output, shape index: {0}]   ;;  %s1366_s12 = inlined_call_operand.hbm [shape: f32[6,4,32], index: 12, kind: output, shape index: {1}]   ;;  %s1367_s13 = inlined_call_operand.vmem [shape: f32[6,9,4], index: 13, kind: output, shape index: {2}]   ;;  %s1368_s14 = inlined_call_operand.hbm [shape: f32[6,4,32], index: 14, kind: output, shape index: {3}]  }
   0x1   :  { %v81_v0 = vld [vmem:[%s1359_s5] sm:$0xff]  ;;  %720 = vset.pattern.permute.xlu0 %v786_v2  ;;  %721 = vset.pattern.permute.xlu1 %v786_v2  ;;  %v82_v3 = vld [vmem:[%s1359_s5 + $0x8] sm:$0x1]  ;;  %v882_v4 = vld [vmem:[%s1354_s0 + $0x10] sm:$0xff] }
   0x2   :  { %v44_v1 = vld [vmem:[%s1354_s0] sm:$0xff]  ;;  %128 = vperm.xlu0 %720, %v81_v0   ;;  %v47_v7 = vld [vmem:[%s1354_s0 + $0x18] sm:$0x1]  ;;  %v49_v14 = vld [vmem:[%s1354_s0 + $0x28] sm:$0x1]  ;;  %v903_v15 = vshrl.u32 %v386_v13, 7 }
   0x3   :  { %200 = vperm.xlu1 %721, %v44_v1   ;;  %v69_v5 = vld [vmem:[%s1356_s2 + $0x1] sm:$0x1]  ;;  %v68_v6 = vld [vmem:[%s1356_s2] sm:$0x1]  ;;  %v73_v10 = vld [vmem:[%s1356_s2 + $0x5] sm:$0x1] }
   0x4   :  { %vm565_vm0 = vcmp.eq.f32.partialorder %v69_v5, 0.0  ;;  %vm564_vm1 = vcmp.eq.f32.partialorder %v68_v6, 0.0  ;;  %vm569_vm2 = vcmp.eq.f32.partialorder %v73_v10, 0.0 }
   0x5   :  { %v571_v8 = vsel %vm565_vm0, 1.0, %v69_v5  ;;  %v570_v9 = vsel %vm564_vm1, 1.0, %v68_v6  ;;  %v575_v11 = vsel %vm569_vm2, 1.0, %v73_v10 }
   0x6   :  { %133 = vperm.xlu0 %720, %v82_v3   ;;  %726 = vrcp.f32 %v571_v8 }
   0x7   :  { %210 = vperm.xlu1 %721, %v882_v4   ;;  %728 = vrcp.f32 %v570_v9 }
   0x8   :  { %730 = vrcp.f32 %v575_v11 }
   0xa   :  { %722 = vset.pattern.permute.xlu0 %v787_v12 }
   0xb   :  { %215 = vperm.xlu1 %721, %v47_v7   ;;  %271 = vperm.xlu0 %722, %v44_v1  }
   0xf   :  { %225 = vperm.xlu1 %721, %v49_v14  }
  0x10   :  { %21 = vsyncpa [#allocation5], 0  ;;  %v51_v16 = vld [vmem:[%s1354_s0 + $0x38] sm:$0x1]  ;;  %283 = vperm.xlu0 %722, %v47_v7   ;;  %v70_v17 = vld [vmem:[%s1356_s2 + $0x2] sm:$0x1]  ;;  %v727_v18 = vpop.eup %726 }
  0x11   :  { %v912_v19 = vsub.s32 0, %v903_v15  ;;  %vm566_vm3 = vcmp.eq.f32.partialorder %v70_v17, 0.0  ;;  %v729_v20 = vpop.eup %728  ;;  %v53_v21 = vld [vmem:[%s1354_s0 + $0x48] sm:$0x1]  ;;  %v583_v22 = vsel %vm565_vm0, 0.0, %v727_v18  ;;  %v924_v27 = vld [vmem:[%s1355_s1 + $0x10] sm:$0xff] }
  0x12   :  { %v572_v23 = vsel %vm566_vm3, 1.0, %v70_v17  ;;  %v731_v24 = vpop.eup %730  ;;  %v582_v26 = vsel %vm564_vm1, 0.0, %v729_v20  ;;  %v931_v30 = vld [vmem:[%s1355_s1 + $0x18] sm:$0x1]  ;;  %v71_v31 = vld [vmem:[%s1356_s2 + $0x3] sm:$0x1] }
  0x13   :  { %235 = vperm.xlu1 %721, %v51_v16   ;;  %v601_v25 = vrot.slane %v583_v22, %v912_v19  ;;  %732 = vrcp.f32 %v572_v23  ;;  %v597_v28 = vrot.slane %v582_v26, %v912_v19  ;;  %v587_v29 = vsel %vm569_vm2, 0.0, %v731_v24  ;;  %v940_v33 = vld [vmem:[%s1355_s1] sm:$0xff]  ;;  %v946_v35 = vld [vmem:[%s1355_s1 + $0x8] sm:$0x1]  ;;  %v952_v37 = vld [vmem:[%s1354_s0 + $0x58] sm:$0x1] }
  0x14   :  { %291 = vperm.xlu0 %722, %v49_v14   ;;  %v617_v34 = vrot.slane %v587_v29, %v912_v19  ;;  %vm567_vm4 = vcmp.eq.f32.partialorder %v71_v31, 0.0  ;;  %v958_v39 = vld [vmem:[%s1355_s1 + $0x58] sm:$0x1]  ;;  %vm148_vm5 = vcmask 31744   ;;  %vm152_vm6 = vcmask 24576   ;;  %v986_v49 = vld [vmem:[%s1354_s0 + $0x50] sm:$0xff] }
  0x15   :  { %v626_v32 = vmul.f32 %v601_v25, %v924_v27  ;;  %v627_v36 = vmul.f32 %v601_v25, %v931_v30  ;;  %v624_v38 = vmul.f32 %v597_v28, %v940_v33  ;;  %v625_v40 = vmul.f32 %v597_v28, %v946_v35  ;;  %v45_v48 = vld [vmem:[%s1354_s0 + $0x8] sm:$0x1]  ;;  %v72_v51 = vld [vmem:[%s1356_s2 + $0x4] sm:$0x1]  ;;  %v66_v1 = vld [vmem:[%s1355_s1 + $0x50] sm:$0xff]  ;;  %s789_s26 = smov [#allocation4]  }
  0x16   :  { %v573_v41 = vsel %vm567_vm4, 1.0, %v71_v31  ;;  %v635_v43 = vmul.f32 %v617_v34, %v958_v39  ;;  %vm568_vm7 = vcmp.eq.f32.partialorder %v72_v51, 0.0  ;;  %v60_v55 = vld [vmem:[%s1355_s1 + $0x20] sm:$0xff]  ;;  %v1005_v56 = vld [vmem:[%s1355_s1 + $0x28] sm:$0x1]  ;;  %v62_v3 = vld [vmem:[%s1355_s1 + $0x30] sm:$0xff]  ;;  %v634_v5 = vmul.f32 %v617_v34, %v66_v1 }
  0x17   :  { %245 = vperm.xlu1 %721, %v53_v21   ;;  %v638_v42 = vmin.f32 %v626_v32, 1.0  ;;  %v639_v44 = vmin.f32 %v627_v36, 1.0  ;;  %734 = vrcp.f32 %v573_v41  ;;  %v636_v45 = vmin.f32 %v624_v38, 1.0  ;;  %v48_v61 = vld [vmem:[%s1354_s0 + $0x20] sm:$0xff]  ;;  %v1035_v9 = vld [vmem:[%s1354_s0 + $0x30] sm:$0xff]  ;;  %s681_s27 = sshll.u32 %s789_s26, 4  ;;  %s682_s27 = int_to_ptr.vmem [resolvable:$true] %s681_s27 }
  0x18   :  { %299 = vperm.xlu0 %722, %v51_v16   ;;  %v637_v46 = vmin.f32 %v625_v40, 1.0  ;;  %v647_v47 = vmin.f32 %v635_v43, 1.0  ;;  %v574_v54 = vsel %vm568_vm7, 1.0, %v72_v51  ;;  %v646_v8 = vmin.f32 %v634_v5, 1.0  ;;  %v1053_v13 = vld [vmem:[%s1354_s0 + $0x40] sm:$0xff]  ;;  %p743_p1 = scmp.lt.s32.totalorder %s682_s27, %s682_s27 }
  0x19   :  { %650 = vst.msk [vmem:[%s1367_s13 + $0x10] sm:$0xff] %vm148_vm5, %v638_v42  ;;  %648 = vst.msk [vmem:[%s1367_s13] sm:$0xff] %vm148_vm5, %v636_v45  ;;  %736 = vrcp.f32 %v574_v54  ;;  %v64_v17 = vld [vmem:[%s1355_s1 + $0x40] sm:$0xff]  ;;  %v65_v18 = vld [vmem:[%s1355_s1 + $0x48] sm:$0x1]  ;;  %vm92_vm8 = vcmp.gt.f32.partialorder %v924_v27, 0.0 }
  0x1a   :  { %651 = vst.msk [vmem:[%s1367_s13 + $0x18] sm:$0x1] %vm152_vm6, %v639_v44  ;;  %649 = vst.msk [vmem:[%s1367_s13 + $0x8] sm:$0x1] %vm152_vm6, %v637_v46  ;;  %vm90_vm9 = vcmp.gt.f32.partialorder %v940_v33, 0.0  ;;  %vm94_vm10 = vcmp.gt.f32.partialorder %v60_v55, 0.0 }
  0x1b   :  { %255 = vperm.xlu1 %721, %v952_v37   ;;  %659 = vst.msk [vmem:[%s1367_s13 + $0x58] sm:$0x1] %vm152_vm6, %v647_v47  ;;  %vm96_vm11 = vcmp.gt.f32.partialorder %v62_v3, 0.0  ;;  %vm100_vm12 = vcmp.gt.f32.partialorder %v66_v1, 0.0  ;;  %vm101_vm13 = vcmp.gt.f32.partialorder %v958_v39, 0.0  ;;  %vm91_vm14 = vcmp.gt.f32.partialorder %v946_v35, 0.0 }
  0x1c   :  { %307 = vperm.xlu0 %722, %v53_v21   ;;  %658 = vst.msk [vmem:[%s1367_s13 + $0x50] sm:$0xff] %vm148_vm5, %v646_v8  ;;  %v788_v24 = vmov 0.0   ;;  %vm98_vm15 = vcmp.gt.f32.partialorder %v64_v17, 0.0  ;;  %vm93_vm0 = vcmp.gt.f32.partialorder %v931_v30, 0.0  ;;  %vm95_vm1 = vcmp.gt.f32.partialorder %v1005_v56, 0.0 }
  0x1d   :  { %v733_v50 = vpop.eup %732  ;;  %v702_v25 = vsel %vm92_vm8, 1.0, %v788_v24  ;;  %v700_v26 = vsel %vm90_vm9, 1.0, %v788_v24  ;;  %v704_v28 = vsel %vm94_vm10, 1.0, %v788_v24  ;;  %v706_v29 = vsel %vm96_vm11, 1.0, %v788_v24 }
  0x1e   :  { %v584_v52 = vsel %vm566_vm3, 0.0, %v733_v50  ;;  %v710_v27 = vsel %vm100_vm12, 1.0, %v788_v24  ;;  %v711_v32 = vsel %vm101_vm13, 1.0, %v788_v24  ;;  %v701_v33 = vsel %vm91_vm14, 1.0, %v788_v24 }
  0x1f   :  { %723 = vset.pattern.permute.xlu1 %v787_v12  ;;  %v605_v53 = vrot.slane %v584_v52, %v912_v19  ;;  %vm99_vm3 = vcmp.gt.f32.partialorder %v65_v18, 0.0  ;;  %v708_v35 = vsel %vm98_vm15, 1.0, %v788_v24  ;;  %v703_v39 = vsel %vm93_vm0, 1.0, %v788_v24 }
  0x20   :  { %275 = vperm.xlu1 %723, %v45_v48   ;;  %311 = vperm.xlu0 %722, %v986_v49   ;;  %v705_v40 = vsel %vm95_vm1, 1.0, %v788_v24  ;;  %v709_v45 = vsel %vm99_vm3, 1.0, %v788_v24 }
  0x21   :  { %v735_v57 = vpop.eup %734  ;;  %v628_v58 = vmul.f32 %v605_v53, %v60_v55  ;;  %v629_v59 = vmul.f32 %v605_v53, %v1005_v56 }
  0x22   :  { %v585_v60 = vsel %vm567_vm4, 0.0, %v735_v57  ;;  %vm471_vm4 = vcmask 27648  }
  0x23   :  { %v640_v62 = vmin.f32 %v628_v58, 1.0  ;;  %v641_v63 = vmin.f32 %v629_v59, 1.0  ;;  %v609_v0 = vrot.slane %v585_v60, %v912_v19  ;;  %v737_v12 = vpop.eup %736 }
  0x24   :  { %279 = vperm.xlu1 %723, %v882_v4   ;;  %724 = vset.pattern.permute.xlu0 %v786_v2  ;;  %v63_v4 = vld [vmem:[%s1355_s1 + $0x38] sm:$0x1]  ;;  %v586_v14 = vsel %vm568_vm7, 0.0, %v737_v12  ;;  %vm374_vm7 = vcmask 253952  }
  0x25   :  { %205 = vperm.xlu0 %724, %v45_v48   ;;  %652 = vst.msk [vmem:[%s1367_s13 + $0x20] sm:$0xff] %vm148_vm5, %v640_v62  ;;  %v630_v6 = vmul.f32 %v609_v0, %v62_v3  ;;  %v631_v7 = vmul.f32 %v609_v0, %v63_v4  ;;  %v613_v16 = vrot.slane %v586_v14, %v912_v19  ;;  %vm97_vm2 = vcmp.gt.f32.partialorder %v63_v4, 0.0 }
  0x26   :  { %653 = vst.msk [vmem:[%s1367_s13 + $0x28] sm:$0x1] %vm152_vm6, %v641_v63  ;;  %v707_v44 = vsel %vm97_vm2, 1.0, %v788_v24 }
  0x27   :  { %v642_v10 = vmin.f32 %v630_v6, 1.0  ;;  %v643_v11 = vmin.f32 %v631_v7, 1.0  ;;  %v632_v20 = vmul.f32 %v613_v16, %v64_v17  ;;  %v633_v21 = vmul.f32 %v613_v16, %v65_v18 }
  0x28   :  { %287 = vperm.xlu1 %723, %v48_v61  }
  0x29   :  { %220 = vperm.xlu0 %724, %v48_v61   ;;  %654 = vst.msk [vmem:[%s1367_s13 + $0x30] sm:$0xff] %vm148_vm5, %v642_v10  ;;  %v644_v22 = vmin.f32 %v632_v20, 1.0  ;;  %v645_v23 = vmin.f32 %v633_v21, 1.0 }
  0x2a   :  { %655 = vst.msk [vmem:[%s1367_s13 + $0x38] sm:$0x1] %vm152_vm6, %v643_v11 }
  0x2b   :  { %656 = vst.msk [vmem:[%s1367_s13 + $0x40] sm:$0xff] %vm148_vm5, %v644_v22 }
  0x2c   :  { %295 = vperm.xlu1 %723, %v1035_v9   ;;  %657 = vst.msk [vmem:[%s1367_s13 + $0x48] sm:$0x1] %vm152_vm6, %v645_v23 }
  0x30   :  { %303 = vperm.xlu1 %723, %v1053_v13  }
  0x81   :  { %v129_v31 = vpop.permute.xlu0 %128 }
  0x82   :  { %v138_v34 = vmul.f32 %v702_v25, %v129_v31  ;;  %v136_v36 = vmul.f32 %v700_v26, %v129_v31  ;;  %v140_v38 = vmul.f32 %v704_v28, %v129_v31  ;;  %v142_v41 = vmul.f32 %v706_v29, %v129_v31  ;;  %v80_v29 = vld [vmem:[%s1358_s4] sm:$0xf] }
  0x83   :  { %v146_v42 = vmul.f32 %v710_v27, %v129_v31  ;;  %v144_v48 = vmul.f32 %v708_v35, %v129_v31 }
  0x84   :  { %v156_v43 = vsel %vm148_vm5, %v138_v34, 0.0  ;;  %v149_v30 = vsel %vm148_vm5, %v136_v36, 0.0  ;;  %v162_v47 = vsel %vm148_vm5, %v140_v38, 0.0  ;;  %v168_v54 = vsel %vm148_vm5, %v142_v41, 0.0 }
  0x85   :  { %v134_v46 = vpop.permute.xlu0 %133  ;;  %157 = vadd.xlane.f32.xlu0 %v156_v43  ;;  %150 = vadd.xlane.f32.xlu1 %v149_v30  ;;  %v1083_v57 = vsel %vm148_vm5, %v146_v42, 0.0  ;;  %v174_v4 = vsel %vm148_vm5, %v144_v48, 0.0  ;;  %vm372_vm5 = vcmask 261120  }
  0x86   :  { %v147_v50 = vmul.f32 %v711_v32, %v134_v46  ;;  %v137_v51 = vmul.f32 %v701_v33, %v134_v46  ;;  %v139_v52 = vmul.f32 %v703_v39, %v134_v46  ;;  %v141_v53 = vmul.f32 %v705_v40, %v134_v46 }
  0x87   :  { %v143_v55 = vmul.f32 %v707_v44, %v134_v46  ;;  %v145_v56 = vmul.f32 %v709_v45, %v134_v46 }
  0x88   :  { %v183_v58 = vsel %vm152_vm6, %v147_v50, 0.0  ;;  %v153_v59 = vsel %vm152_vm6, %v137_v51, 0.0  ;;  %v159_v60 = vsel %vm152_vm6, %v139_v52, 0.0  ;;  %v165_v61 = vsel %vm152_vm6, %v141_v53, 0.0 }
  0x89   :  { %184 = vadd.xlane.f32.xlu0 %v183_v58  ;;  %v423_v62 = vadd.f32 %v153_v59, %v149_v30  ;;  %154 = vadd.xlane.f32.xlu1 %v153_v59  ;;  %v430_v63 = vadd.f32 %v159_v60, %v156_v43  ;;  %v437_v0 = vadd.f32 %v165_v61, %v162_v47  ;;  %v171_v1 = vsel %vm152_vm6, %v143_v55, 0.0 }
  0x8a   :  { %v444_v3 = vadd.f32 %v171_v1, %v168_v54  ;;  %v177_v5 = vsel %vm152_vm6, %v145_v56, 0.0  ;;  %v458_v6 = vadd.f32 %v183_v58, %v1083_v57  ;;  %vm416_vm6 = vcmask 257024  }
  0x8b   :  { %v431_v7 = vrot.slane %v430_v63, 4  ;;  %v438_v8 = vrot.slane %v437_v0, 4  ;;  %v451_v10 = vadd.f32 %v177_v5, %v174_v4  ;;  %v424_v20 = vrot.slane %v423_v62, 4 }
  0x8c   :  { %v445_v27 = vrot.slane %v444_v3, 4  ;;  %v459_v35 = vrot.slane %v458_v6, 4 }
  0x8d   :  { %v432_v11 = vadd.f32 %v431_v7, %v430_v63  ;;  %160 = vadd.xlane.f32.xlu1 %v159_v60  ;;  %v439_v12 = vadd.f32 %v438_v8, %v437_v0  ;;  %v452_v14 = vrot.slane %v451_v10, 4  ;;  %v425_v28 = vadd.f32 %v424_v20, %v423_v62 }
  0x8e   :  { %v446_v38 = vadd.f32 %v445_v27, %v444_v3  ;;  %v460_v30 = vadd.f32 %v459_v35, %v458_v6  ;;  %v201_v6 = vpop.permute.xlu1 %200  ;;  %v1147_v27 = vld [vmem:[%s1360_s6] sm:$0xff] }
  0x8f   :  { %v433_v16 = vrot.slane %v432_v11, 2  ;;  %v440_v17 = vrot.slane %v439_v12, 2  ;;  %v453_v18 = vadd.f32 %v452_v14, %v451_v10  ;;  %v426_v36 = vrot.slane %v425_v28, 2 }
  0x90   :  { %v447_v43 = vrot.slane %v446_v38, 2 }
  0x91   :  { %v434_v21 = vadd.f32 %v433_v16, %v432_v11  ;;  %163 = vadd.xlane.f32.xlu1 %v162_v47  ;;  %v441_v22 = vadd.f32 %v440_v17, %v439_v12  ;;  %v454_v23 = vrot.slane %v453_v18, 2  ;;  %v427_v42 = vadd.f32 %v426_v36, %v425_v28 }
  0x92   :  { %v448_v46 = vadd.f32 %v447_v43, %v446_v38  ;;  %v461_v47 = vrot.slane %v460_v30, 2  ;;  %v211_v10 = vpop.permute.xlu1 %210 }
  0x93   :  { %v435_v24 = vrot.slane %v434_v21, 1  ;;  %v442_v25 = vrot.slane %v441_v22, 1  ;;  %v455_v26 = vadd.f32 %v454_v23, %v453_v18  ;;  %v428_v48 = vrot.slane %v427_v42, 1 }
  0x94   :  { %v462_v51 = vadd.f32 %v461_v47, %v460_v30  ;;  %v449_v53 = vrot.slane %v448_v46, 1  ;;  %v260_v38 = vmul.f32 %v211_v10, %v1147_v27 }
  0x95   :  { %166 = vadd.xlane.f32.xlu1 %v165_v61  ;;  %v436_v31 = vadd.f32 %v435_v24, %v434_v21  ;;  %v443_v32 = vadd.f32 %v442_v25, %v441_v22  ;;  %v456_v33 = vrot.slane %v455_v26, 1  ;;  %v429_v52 = vadd.f32 %v428_v48, %v427_v42  ;;  %v1168_v42 = vld [vmem:[%s1361_s7 + $0x8] sm:$0x1] }
  0x96   :  { %v450_v55 = vadd.f32 %v449_v53, %v448_v46  ;;  %v463_v56 = vrot.slane %v462_v51, 1  ;;  %v216_v11 = vpop.permute.xlu1 %215 }
  0x97   :  { %v466_v34 = vmul.f32 %v436_v31, %v80_v29  ;;  %v467_v40 = vmul.f32 %v443_v32, %v80_v29  ;;  %v457_v41 = vadd.f32 %v456_v33, %v455_v26  ;;  %v1152_v31 = vld [vmem:[%s1361_s7] sm:$0xff] }
  0x98   :  { %v468_v59 = vmul.f32 %v450_v55, %v80_v29  ;;  %v464_v60 = vadd.f32 %v463_v56, %v462_v51 }
  0x99   :  { %169 = vadd.xlane.f32.xlu1 %v168_v54  ;;  %v475_v39 = vsel %vm471_vm4, %v466_v34, 0.0  ;;  %v478_v44 = vsel %vm471_vm4, %v467_v40, 0.0  ;;  %v469_v45 = vmul.f32 %v457_v41, %v80_v29  ;;  %v465_v54 = vmul.f32 %v429_v52, %v80_v29 }
  0x9a   :  { %476 = vadd.xlane.f32.xlu0 %v475_v39  ;;  %v481_v61 = vsel %vm471_vm4, %v468_v59, 0.0  ;;  %v470_v62 = vmul.f32 %v464_v60, %v80_v29  ;;  %v1126_v12 = vpop.permute.xlu1 %225  ;;  %v258_v34 = vmul.f32 %v201_v6, %v1147_v27  ;;  %v1163_v39 = vld [vmem:[%s1362_s8] ss:$0 sm:$0xff] }
  0x9b   :  { %v484_v50 = vsel %vm471_vm4, %v469_v45, 0.0  ;;  %v472_v58 = vsel %vm471_vm4, %v465_v54, 0.0  ;;  %v1184_v59 = vld [vmem:[%s1364_s10] sm:$0xf] }
  0x9c   :  { %v487_v63 = vsel %vm471_vm4, %v470_v62, 0.0 }
  0x9d   :  { %172 = vadd.xlane.f32.xlu1 %v171_v1  ;;  %v78_v1 = vld [vmem:[%s1357_s3 + $0x10] sm:$0xf] }
  0x9e   :  { %479 = vadd.xlane.f32.xlu0 %v478_v44  ;;  %v494_v3 = vmul.f32 0.1, %v78_v1  ;;  %v1128_v14 = vpop.permute.xlu1 %235  ;;  %v1173_v44 = vld [vmem:[%s1360_s6 + $0x8] sm:$0x1]  ;;  %s738_s6 = scalar_lea.vmem %s682_s27, 384 }
  0x9f   :  { %v261_v56 = vmul.f32 %v216_v11, %v1173_v44  ;;  %p739_p0 = scmp.ne.s32.totalorder %s682_s27, %s738_s6  ;;  %p744_p2 = scmp.lt.s32.totalorder %s738_s6, %s738_s6 }
  0xa1   :  { %175 = vadd.xlane.f32.xlu1 %v174_v4  ;;  %v74_v4 = vld [vmem:[%s1357_s3] sm:$0xf]  ;;  %p745_p3 = por %p744_p2, %p743_p1 }
  0xa2   :  { %485 = vadd.xlane.f32.xlu0 %v484_v50  ;;  %v1130_v17 = vpop.permute.xlu1 %245 }
  0xa3   :  { %p746_p4 = pnand %p745_p3, %p739_p0 }
  0xa5   :  { %178 = vadd.xlane.f32.xlu1 %v177_v5  ;;  %v77_v5 = vld [vmem:[%s1357_s3 + $0xc] sm:$0xf] }
  0xa6   :  { %v493_v7 = vmul.f32 0.1, %v77_v5  ;;  %v1134_v20 = vpop.permute.xlu1 %255 }
  0xa9   :  { %181 = vadd.xlane.f32.xlu1 %v1083_v57  ;;  %v75_v57 = vld [vmem:[%s1357_s3 + $0x4] sm:$0xf] }
  0xaa   :  { %v491_v0 = vmul.f32 0.1, %v75_v57  ;;  %v276_v22 = vpop.permute.xlu1 %275 }
  0xab   :  { %v319_v46 = vmul.f32 %v276_v22, %v1168_v42 }
  0xad   :  { %473 = vadd.xlane.f32.xlu1 %v472_v58 }
  0xae   :  { %v280_v24 = vpop.permute.xlu1 %279 }
  0xaf   :  { %v320_v35 = vmul.f32 %v280_v24, %v1152_v31 }
  0xb1   :  { %482 = vadd.xlane.f32.xlu1 %v481_v61  ;;  %v332_v47 = vadd.f32 %v320_v35, %v260_v38  ;;  %v265_v35 = vmul.f32 %v1128_v14, %v1173_v44  ;;  %v267_v14 = vmul.f32 %v1130_v17, %v1173_v44 }
  0xb2   :  { %v288_v26 = vpop.permute.xlu1 %287 }
  0xb5   :  { %488 = vadd.xlane.f32.xlu1 %v487_v63 }
  0xb6   :  { %v1142_v29 = vpop.permute.xlu1 %295 }
  0xb7   :  { %v324_v17 = vmul.f32 %v1142_v29, %v1152_v31  ;;  %v88_v29 = vld [vmem:[%s1363_s9] sm:$0x3] }
  0xb8   :  { %230 = vperm.xlu0 %724, %v1035_v9   ;;  %v490_v9 = vmul.f32 0.1, %v74_v4 }
  0xba   :  { %v1154_v33 = vpop.permute.xlu1 %303 }
  0xbc   :  { %240 = vperm.xlu0 %724, %v1053_v13   ;;  %v76_v13 = vld [vmem:[%s1357_s3 + $0x8] sm:$0xf] }
  0xc0   :  { %250 = vperm.xlu0 %724, %v986_v49   ;;  %v492_v49 = vmul.f32 0.1, %v76_v13  ;;  %v322_v13 = vmul.f32 %v288_v26, %v1152_v31 }
  0xc4   :  { %503 = vperm.xlu0 %724, %v491_v0  }
  0xc6   :  { %315 = vperm.xlu1 %723, %v952_v37   ;;  %v79_v37 = vld [vmem:[%s1357_s3 + $0x14] sm:$0xf] }
  0xc7   :  { %v495_v8 = vmul.f32 0.1, %v79_v37 }
  0xc8   :  { %518 = vperm.xlu0 %724, %v494_v3  }
  0xca   :  { %725 = vset.pattern.permute.xlu1 %v786_v2  ;;  %v272_v2 = vpop.permute.xlu0 %271 }
  0xcb   :  { %498 = vperm.xlu1 %725, %v490_v9   ;;  %v318_v36 = vmul.f32 %v272_v2, %v1152_v31 }
  0xcd   :  { %v330_v45 = vadd.f32 %v318_v36, %v258_v34 }
  0xce   :  { %v284_v16 = vpop.permute.xlu0 %283 }
  0xcf   :  { %508 = vperm.xlu1 %725, %v492_v49   ;;  %v321_v58 = vmul.f32 %v284_v16, %v1168_v42 }
  0xd1   :  { %v333_v9 = vadd.f32 %v321_v58, %v261_v56 }
  0xd2   :  { %v1132_v18 = vpop.permute.xlu0 %291 }
  0xd3   :  { %513 = vperm.xlu1 %725, %v493_v7   ;;  %v323_v10 = vmul.f32 %v1132_v18, %v1168_v42 }
  0xd6   :  { %v1136_v21 = vpop.permute.xlu0 %299 }
  0xd7   :  { %523 = vperm.xlu1 %725, %v495_v8   ;;  %v263_v8 = vmul.f32 %v1126_v12, %v1173_v44 }
  0xda   :  { %v1138_v23 = vpop.permute.xlu0 %307 }
  0xde   :  { %v1140_v25 = vpop.permute.xlu0 %311 }
  0xe2   :  { %v206_v28 = vpop.permute.xlu0 %205 }
  0xe3   :  { %v259_v48 = vmul.f32 %v206_v28, %v1173_v44  ;;  %v335_v28 = vadd.f32 %v323_v10, %v263_v8 }
  0xe5   :  { %v331_v60 = vadd.f32 %v319_v46, %v259_v48 }
  0xe6   :  { %v221_v32 = vpop.permute.xlu0 %220 }
  0xe7   :  { %v262_v49 = vmul.f32 %v221_v32, %v1147_v27 }
  0xe9   :  { %v334_v11 = vadd.f32 %v322_v13, %v262_v49 }
 0x112   :  { %v158_v40 = vpop.xlane.xlu0 %157  ;;  %v151_v41 = vpop.xlane.xlu1 %150 }
 0x113   :  { %v188_v43 = vmul.f32 0.25, %v158_v40  ;;  %v186_v30 = vmul.f32 0.25, %v151_v41  ;;  %v325_v40 = vmul.f32 %v1136_v21, %v1168_v42  ;;  %v327_v21 = vmul.f32 %v1138_v23, %v1168_v42 }
 0x115   :  { %v350_v50 = vmul.f32 %v1163_v39, %v188_v43  ;;  %v348_v51 = vmul.f32 %v1163_v39, %v186_v30  ;;  %v337_v30 = vadd.f32 %v325_v40, %v265_v35 }
 0x116   :  { %v155_v52 = vpop.xlane.xlu1 %154  ;;  %v1217_v22 = vpop.xlane.xlu0 %184 }
 0x117   :  { %v362_v53 = vadd.f32 %v350_v50, %v332_v47  ;;  %v360_v54 = vadd.f32 %v348_v51, %v330_v45  ;;  %v187_v55 = vmul.f32 0.25, %v155_v52 }
 0x119   :  { %376 = vst.msk [vmem:[%s1365_s11 + $0x10] sm:$0xff] %vm372_vm5, %v362_v53  ;;  %v393_v61 = vrot.slane %v362_v53, %v912_v19  ;;  %373 = vst.msk [vmem:[%s1365_s11] sm:$0xff] %vm372_vm5, %v360_v54  ;;  %v389_v62 = vrot.slane %v360_v54, %v912_v19  ;;  %v349_v63 = vmul.f32 %v1163_v39, %v187_v55 }
 0x11a   :  { %v161_v57 = vpop.xlane.xlu1 %160  ;;  %v339_v53 = vadd.f32 %v327_v21, %v267_v14 }
 0x11b   :  { %v411_v0 = vadd.f32 %v393_v61, %v1184_v59  ;;  %v410_v1 = vadd.f32 %v389_v62, %v1184_v59  ;;  %v361_v3 = vadd.f32 %v349_v63, %v331_v60  ;;  %v189_v4 = vmul.f32 0.25, %v161_v57 }
 0x11d   :  { %418 = vst.msk [vmem:[#allocation4 + $0x4] sm:$0xf] %vm416_vm6, %v411_v0  ;;  %417 = vst.msk [vmem:[#allocation4] sm:$0xf] %vm416_vm6, %v410_v1  ;;  %v351_v5 = vmul.f32 %v1163_v39, %v189_v4  ;;  %v544_v0 = vsub.s32 1, %v903_v15 }
 0x11e   :  { %375 = vst.msk [vmem:[%s1365_s11 + $0x8] sm:$0x1] %vm374_vm7, %v361_v3  ;;  %v164_v6 = vpop.xlane.xlu1 %163  ;;  %v326_v3 = vmul.f32 %v1154_v33, %v1152_v31  ;;  %v328_v33 = vmul.f32 %v1140_v25, %v1152_v31 }
 0x11f   :  { %v363_v7 = vadd.f32 %v351_v5, %v333_v9  ;;  %v190_v37 = vmul.f32 0.25, %v164_v6 }
 0x121   :  { %377 = vst.msk [vmem:[%s1365_s11 + $0x18] sm:$0x1] %vm374_vm7, %v363_v7  ;;  %v352_v2 = vmul.f32 %v1163_v39, %v190_v37  ;;  %v1272_v7 = vrot.slane %v88_v29, %v544_v0 }
 0x122   :  { %v167_v16 = vpop.xlane.xlu1 %166 }
 0x123   :  { %v364_v24 = vadd.f32 %v352_v2, %v334_v11  ;;  %v191_v26 = vmul.f32 0.25, %v167_v16  ;;  %v1277_v16 = vrot.slane %v88_v29, %v912_v19 }
 0x125   :  { %378 = vst.msk [vmem:[%s1365_s11 + $0x20] sm:$0xff] %vm372_vm5, %v364_v24  ;;  %v397_v12 = vrot.slane %v364_v24, %v912_v19  ;;  %v353_v18 = vmul.f32 %v1163_v39, %v191_v26 }
 0x126   :  { %v170_v32 = vpop.xlane.xlu1 %169 }
 0x127   :  { %v412_v34 = vadd.f32 %v397_v12, %v1184_v59  ;;  %v365_v36 = vadd.f32 %v353_v18, %v335_v28  ;;  %v477_v38 = vpop.xlane.xlu0 %476  ;;  %v192_v55 = vmul.f32 0.25, %v170_v32 }
 0x128   :  { %v537_v37 = vmul.f32 0.125, %v477_v38 }
 0x129   :  { %419 = vst.msk [vmem:[#allocation4 + $0x8] sm:$0xf] %vm416_vm6, %v412_v34  ;;  %v354_v61 = vmul.f32 %v1163_v39, %v192_v55 }
 0x12a   :  { %379 = vst.msk [vmem:[%s1365_s11 + $0x28] sm:$0x1] %vm374_vm7, %v365_v36  ;;  %v173_v41 = vpop.xlane.xlu1 %172  ;;  %v547_v28 = vmul.f32 %v1272_v7, %v537_v37  ;;  %v197_v36 = vmul.f32 0.25, %v1217_v22 }
 0x12b   :  { %v193_v43 = vmul.f32 0.25, %v173_v41  ;;  %v1236_v46 = vpop.xlane.xlu0 %479  ;;  %v269_v41 = vmul.f32 %v1134_v20, %v1173_v44 }
 0x12c   :  { %v538_v44 = vmul.f32 0.125, %v1236_v46 }
 0x12d   :  { %v355_v45 = vmul.f32 %v1163_v39, %v193_v43 }
 0x12e   :  { %v176_v47 = vpop.xlane.xlu1 %175 }
 0x12f   :  { %v367_v48 = vadd.f32 %v355_v45, %v337_v30  ;;  %v486_v51 = vpop.xlane.xlu0 %485  ;;  %v194_v62 = vmul.f32 0.25, %v176_v47 }
 0x131   :  { %381 = vst.msk [vmem:[%s1365_s11 + $0x38] sm:$0x1] %vm374_vm7, %v367_v48  ;;  %v356_v13 = vmul.f32 %v1163_v39, %v194_v62 }
 0x132   :  { %v179_v50 = vpop.xlane.xlu1 %178 }
 0x133   :  { %v195_v52 = vmul.f32 0.25, %v179_v50 }
 0x135   :  { %v357_v54 = vmul.f32 %v1163_v39, %v195_v52 }
 0x136   :  { %v182_v56 = vpop.xlane.xlu1 %181 }
 0x137   :  { %v369_v58 = vadd.f32 %v357_v54, %v339_v53  ;;  %v231_v60 = vpop.permute.xlu0 %230  ;;  %v196_v49 = vmul.f32 0.25, %v182_v56 }
 0x138   :  { %v264_v23 = vmul.f32 %v231_v60, %v1147_v27 }
 0x139   :  { %383 = vst.msk [vmem:[%s1365_s11 + $0x48] sm:$0x1] %vm374_vm7, %v369_v58  ;;  %v358_v24 = vmul.f32 %v1163_v39, %v196_v49 }
 0x13a   :  { %v336_v63 = vadd.f32 %v324_v17, %v264_v23  ;;  %v474_v57 = vpop.xlane.xlu1 %473 }
 0x13b   :  { %v241_v1 = vpop.permute.xlu0 %240  ;;  %v536_v43 = vmul.f32 0.125, %v474_v57 }
 0x13c   :  { %v366_v4 = vadd.f32 %v354_v61, %v336_v63  ;;  %v266_v9 = vmul.f32 %v241_v1, %v1147_v27 }
 0x13e   :  { %380 = vst.msk [vmem:[%s1365_s11 + $0x30] sm:$0xff] %vm372_vm5, %v366_v4  ;;  %v401_v15 = vrot.slane %v366_v4, %v912_v19  ;;  %v338_v5 = vadd.f32 %v326_v3, %v266_v9  ;;  %v1268_v6 = vpop.xlane.xlu1 %482 }
 0x13f   :  { %v251_v8 = vpop.permute.xlu0 %250 }
 0x140   :  { %v413_v10 = vadd.f32 %v401_v15, %v1184_v59  ;;  %v368_v11 = vadd.f32 %v356_v13, %v338_v5  ;;  %v268_v2 = vmul.f32 %v251_v8, %v1147_v27  ;;  %v540_v27 = vmul.f32 0.125, %v486_v51 }
 0x142   :  { %420 = vst.msk [vmem:[#allocation4 + $0xc] sm:$0xf] %vm416_vm6, %v413_v10  ;;  %v405_v25 = vrot.slane %v368_v11, %v912_v19  ;;  %v340_v31 = vadd.f32 %v328_v33, %v268_v2  ;;  %v489_v26 = vpop.xlane.xlu1 %488  ;;  %v550_v45 = vmul.f32 %v1272_v7, %v540_v27 }
 0x143   :  { %382 = vst.msk [vmem:[%s1365_s11 + $0x40] sm:$0xff] %vm372_vm5, %v368_v11  ;;  %v504_v12 = vpop.permute.xlu0 %503 }
 0x144   :  { %v414_v18 = vadd.f32 %v405_v25, %v1184_v59  ;;  %v370_v32 = vadd.f32 %v358_v24, %v340_v31  ;;  %v531_v34 = vmul.f32 %v1277_v16, %v504_v12 }
 0x146   :  { %421 = vst.msk [vmem:[#allocation4 + $0x10] sm:$0xf] %vm416_vm6, %v414_v18  ;;  %v409_v38 = vrot.slane %v370_v32, %v912_v19  ;;  %v553_v35 = vadd.f32 %v547_v28, %v531_v34  ;;  %v316_v40 = vpop.permute.xlu1 %315  ;;  %v359_v19 = vmul.f32 %v1163_v39, %v197_v36 }
 0x147   :  { %384 = vst.msk [vmem:[%s1365_s11 + $0x50] sm:$0xff] %vm372_vm5, %v370_v32  ;;  %v329_v30 = vmul.f32 %v316_v40, %v1168_v42  ;;  %v519_v22 = vpop.permute.xlu0 %518  ;;  %v546_v42 = vmul.f32 %v1272_v7, %v536_v43 }
 0x148   :  { %v415_v47 = vadd.f32 %v409_v38, %v1184_v59  ;;  %559 = vst.msk [vmem:[#allocation2 + $0x4] sm:$0xf] %vm416_vm6, %v553_v35  ;;  %v534_v48 = vmul.f32 %v1277_v16, %v519_v22 }
 0x149   :  { %v341_v14 = vadd.f32 %v329_v30, %v269_v41 }
 0x14a   :  { %422 = vst.msk [vmem:[#allocation4 + $0x14] sm:$0xf] %vm416_vm6, %v415_v47  ;;  %v556_v21 = vadd.f32 %v550_v45, %v534_v48  ;;  %v499_v20 = vpop.permute.xlu1 %498 }
 0x14b   :  { %v371_v50 = vadd.f32 %v359_v19, %v341_v14  ;;  %v530_v51 = vmul.f32 %v1277_v16, %v499_v20 }
 0x14c   :  { %749 = shalt.err (!%p746_p4)
}
 0x14d   :  { %s750_s13 = scalar_lea.hbm %s1368_s14, 384 }
 0x14e   :  { %p751_p5 = scmp.ne.s32.totalorder %s1368_s14, %s750_s13  ;;  %p754_p6 = scmp.lt.u32.totalorder %s750_s13, %s1368_s14 }
 0x150   :  { %p756_p7 = pnand %p754_p6, %p751_p5 }
 0x152   :  { %759 = shalt.err (!%p756_p7)
}
 0x153   :  { %s790_s15 = smov 64   ;;  %s791_s16 = smov 4   ;;  %562 = vst.msk [vmem:[#allocation2 + $0x10] sm:$0xf] %vm416_vm6, %v556_v21  ;;  %v552_v39 = vadd.f32 %v546_v42, %v530_v51  ;;  %v509_v59 = vpop.permute.xlu1 %508  ;;  %v548_v46 = vmul.f32 %v1272_v7, %v538_v44  ;;  %v539_v52 = vmul.f32 0.125, %v1268_v6  ;;  %v541_v58 = vmul.f32 0.125, %v489_v26 }
 0x154   :  { %687 = dma.vmem_to_hbm [thread:$0]  %s682_s27, 384, %s1368_s14, [#allocation5], %s790_s15, %s790_s15, %s791_s16   ;;  %v532_v53 = vmul.f32 %v1277_v16, %v509_v59 }
 0x155   :  { %385 = vst.msk [vmem:[%s1365_s11 + $0x58] sm:$0x1] %vm374_vm7, %v371_v50  ;;  %v549_v56 = vmul.f32 %v1272_v7, %v539_v52  ;;  %s792_s11 = smov [#allocation2]   ;;  %v551_v61 = vmul.f32 %v1272_v7, %v541_v58 }
 0x156   :  { %558 = vst.msk [vmem:[#allocation2] sm:$0xf] %vm416_vm6, %v552_v39  ;;  %v554_v54 = vadd.f32 %v548_v46, %v532_v53  ;;  %s667_s14 = sshll.u32 %s792_s11, 4  ;;  %s668_s14 = int_to_ptr.vmem [resolvable:$true] %s667_s14 }
 0x157   :  { %v514_v55 = vpop.permute.xlu1 %513  ;;  %s760_s20 = scalar_lea.vmem %s668_s14, 384  ;;  %p765_p9 = scmp.lt.s32.totalorder %s668_s14, %s668_s14 }
 0x158   :  { %560 = vst.msk [vmem:[#allocation2 + $0x8] sm:$0xf] %vm416_vm6, %v554_v54  ;;  %v533_v60 = vmul.f32 %v1277_v16, %v514_v55  ;;  %p761_p8 = scmp.ne.s32.totalorder %s668_s14, %s760_s20  ;;  %p766_p10 = scmp.lt.s32.totalorder %s760_s20, %s760_s20 }
 0x15a   :  { %v555_v17 = vadd.f32 %v549_v56, %v533_v60  ;;  %p767_p11 = por %p766_p10, %p765_p9 }
 0x15b   :  { %v524_v23 = vpop.permute.xlu1 %523 }
 0x15c   :  { %561 = vst.msk [vmem:[#allocation2 + $0xc] sm:$0xf] %vm416_vm6, %v555_v17  ;;  %v535_v62 = vmul.f32 %v1277_v16, %v524_v23  ;;  %p768_p12 = pnand %p767_p11, %p761_p8 }
 0x15e   :  { %v557_v63 = vadd.f32 %v551_v61, %v535_v62 }
 0x160   :  { %563 = vst.msk [vmem:[#allocation2 + $0x14] sm:$0xf] %vm416_vm6, %v557_v63 }
 0x161   :  { %771 = shalt.err (!%p768_p12)
}
 0x162   :  { %s772_s3 = scalar_lea.hbm %s1366_s12, 384 }
 0x163   :  { %p773_p13 = scmp.ne.s32.totalorder %s1366_s12, %s772_s3  ;;  %p776_p0 = scmp.lt.u32.totalorder %s772_s3, %s1366_s12 }
 0x165   :  { %p778_p1 = pnand %p776_p0, %p773_p13 }
 0x167   :  { %781 = shalt.err (!%p778_p1)
}
 0x168   :  { %673 = dma.vmem_to_hbm [thread:$0]  %s668_s14, 384, %s1366_s12, [#allocation3], %s790_s15, %s790_s15, %s791_s16  }
 0x169   :  { %782 = dma.done.wait [#allocation3], 384  }
 0x16a   :  { %783 = vsyncadd [#allocation3], 4294966912 }
 0x16b   :  { %784 = dma.done.wait [#allocation5], 384  }
 0x16c   :  { %785 = vsyncadd [#allocation5], 4294966912 }
 0x16d   :  { %698 = vsyncpa [#allocation3], 1 }
 0x16e   :  { %699 = vsyncpa [#allocation5], 1 }

</bundles_post_ra>
